<compile_context>
chip_gen: v5e
topology: v5e:2x2
jax: 0.10.0
libtpu: 0.0.40
codegen_flags: <defaults>
</compile_context>

<pallas_src>
import functools

import jax
import jax.numpy as jnp
from jax.experimental import pallas as pl
from jax.experimental.pallas import tpu as pltpu

_LANES = 128
_ALIGN = 8 * _LANES  # 1024 elements = one full (8, 128) f32 tile


def _cdiv(a: int, b: int) -> int:
    return -(-a // b)


def _round_up(a: int, b: int) -> int:
    return _cdiv(a, b) * b


def _is_v7x() -> bool:
    """Best-effort detection of a dual-TensorCore (v7x) chip."""
    try:
        kind = jax.devices()[0].device_kind.lower()
    except Exception:
        return False
    return ("v7" in kind) or ("7x" in kind)


def _pick_tile_rows(rows: int, tile_rows: int) -> int:
    """Pick a sublane-tile size: multiple of 8, <= rows, >= ~8 grid steps when possible."""
    tr = _round_up(max(int(tile_rows), 8), 8)                 # 8-row granularity
    tr = min(tr, max(256, _round_up(_cdiv(rows, 8), 8)))      # aim for >= ~8 steps
    return max(8, min(tr, rows))                              # rows is a multiple of 8


def _linreg_kernel(x_ref, w_ref, b_ref, o_ref):
    # x_ref/o_ref: (tr, 128) tile in VMEM; w_ref/b_ref: (1, 1) f32 in SMEM.
    w = w_ref[0, 0]
    b = b_ref[0, 0]
    y = x_ref[...].astype(jnp.float32) * w + b                # VPU FMA, full 128-lane vregs
    o_ref[...] = y.astype(o_ref.dtype)


def _fma_call(x2d, w_smem, b_smem, *, tile_rows, core_parallel, alias_input):
    rows, lanes = x2d.shape
    tr = _pick_tile_rows(rows, tile_rows)
    grid_len = _cdiv(rows, tr)                                # ragged last block handled by Pallas
    sem = pltpu.CORE_PARALLEL if (core_parallel and grid_len >= 2) else pltpu.PARALLEL
    nbytes = rows * lanes * x2d.dtype.itemsize
    return pl.pallas_call(
        _linreg_kernel,
        out_shape=jax.ShapeDtypeStruct((rows, lanes), x2d.dtype),
        grid=(grid_len,),
        in_specs=[
            pl.BlockSpec((tr, lanes), lambda i: (i, 0)),               # x tile in VMEM
            pl.BlockSpec(memory_space=pltpu.MemorySpace.SMEM),         # weight scalar
            pl.BlockSpec(memory_space=pltpu.MemorySpace.SMEM),         # bias scalar
        ],
        out_specs=pl.BlockSpec((tr, lanes), lambda i: (i, 0)),
        compiler_params=pltpu.CompilerParams(dimension_semantics=(sem,)),
        cost_estimate=pl.CostEstimate(
            flops=2 * rows * lanes, bytes_accessed=2 * nbytes, transcendentals=0),
        input_output_aliases=({0: 0} if alias_input else {}),
    )(x2d, w_smem, b_smem)


@functools.partial(jax.jit, static_argnames=("tile_rows", "core_parallel"))
def _forward(x, weight, bias, *, tile_rows, core_parallel):
    n, in_f = x.shape
    if in_f != 1 or weight.shape != (1, 1) or bias.shape != (1,):
        raise ValueError("expected nn.Linear(1, 1) shapes")
    w_smem = weight.reshape(1, 1).astype(jnp.float32)
    b_smem = bias.reshape(1, 1).astype(jnp.float32)
    flat = x.reshape(-1)

    if n > 0 and n % _ALIGN == 0:
        # Zero-copy fast path: reshape is a bitcast, no pad, no slice.
        x2d = flat.reshape(n // _LANES, _LANES)
        y2d = _fma_call(x2d, w_smem, b_smem, tile_rows=tile_rows,
                        core_parallel=core_parallel, alias_input=False)
        return y2d.reshape(n, 1)

    # Ragged N: pad only to the next (8, 128) tile boundary (<= 1023 elements),
    # alias the output onto the dead padded intermediate, slice back to N.
    n_pad = _round_up(max(n, 1), _ALIGN)
    x2d = jnp.pad(flat, (0, n_pad - n)).reshape(n_pad // _LANES, _LANES)
    y2d = _fma_call(x2d, w_smem, b_smem, tile_rows=tile_rows,
                    core_parallel=core_parallel, alias_input=True)
    return y2d.reshape(-1)[:n].reshape(n, 1)


def linear_regression_forward(x, weight, bias, *, tile_rows=None):
    """y = x @ weight.T + bias for nn.Linear(1, 1), as a streaming Pallas kernel."""
    v7x = _is_v7x()
    if tile_rows is None:
        tile_rows = 8192 if v7x else 4096   # 16 MiB vs 8 MiB double-buffered footprint
    try:
        return _forward(x, weight, bias, tile_rows=int(tile_rows), core_parallel=v7x)
    except Exception:
        if not v7x:
            raise
        # Fall back to plain PARALLEL semantics if CORE_PARALLEL lowering is rejected.
        return _forward(x, weight, bias, tile_rows=int(tile_rows), core_parallel=False)


if __name__ == "__main__":
    key = jax.random.PRNGKey(0)
    k_x1, k_x2, k_x3, k_w, k_b = jax.random.split(key, 5)

    # Deterministic parameter init mimicking PyTorch nn.Linear(1, 1) default:
    # uniform(-1/sqrt(fan_in), 1/sqrt(fan_in)) with fan_in = 1.
    weight = jax.random.uniform(k_w, (1, 1), jnp.float32, minval=-1.0, maxval=1.0)
    bias = jax.random.uniform(k_b, (1,), jnp.float32, minval=-1.0, maxval=1.0)

    def ref(x):
        return x @ weight.T + bias

    # 1) Aligned batch, zero-copy fast path; also exercises rounding of a
    #    user-supplied tile_rows that is not a multiple of 8.
    x1 = jax.random.normal(k_x1, (2048, 1), jnp.float32)
    y1 = jax.block_until_ready(linear_regression_forward(x1, weight, bias, tile_rows=250))
    assert y1.shape == (2048, 1) and y1.dtype == jnp.float32
    assert jnp.allclose(y1, ref(x1), atol=1e-6, rtol=1e-6)

    # 2) Larger aligned batch with the default tile -> multi-step grid,
    #    double-buffered DMA pipelining (rows=1024, tr=256, grid=4).
    x2 = jax.random.normal(k_x2, (131072, 1), jnp.float32)
    y2 = jax.block_until_ready(linear_regression_forward(x2, weight, bias))
    assert y2.shape == (131072, 1)
    assert jnp.allclose(y2, ref(x2), atol=1e-6, rtol=1e-6)

    # 3) Ragged batch -> padded path (<= 1023 padded elements, output aliased
    #    onto the padded intermediate, then sliced back).
    x3 = jax.random.normal(k_x3, (1000, 1), jnp.float32)
    y3 = jax.block_until_ready(linear_regression_forward(x3, weight, bias))
    assert y3.shape == (1000, 1)
    assert jnp.allclose(y3, ref(x3), atol=1e-6, rtol=1e-6)

    print("KERNEL_OK")
</pallas_src>

<mosaic_0001>
module attributes {stable_mosaic.version = 11 : i64} {
  func.func @_linreg_kernel(%arg0: i32, %arg1: memref<16x128xf32, #tpu.memory_space<vmem>>, %arg2: memref<1x1xf32, #tpu.memory_space<smem>>, %arg3: memref<1x1xf32, #tpu.memory_space<smem>>, %arg4: memref<16x128xf32, #tpu.memory_space<vmem>>) attributes {dimension_semantics = [#tpu.dimension_semantics<parallel>], iteration_bounds = array<i64: 1>, scalar_prefetch = 0 : i64, scratch_operands = 0 : i64, tpu.core_type = #tpu.core_type<tc>, window_params = [{transform_indices = @transform_0, window_bounds = array<i64: 16, 128>}, {transform_indices = @transform_1, window_bounds = array<i64: 1, 1>}, {transform_indices = @transform_2, window_bounds = array<i64: 1, 1>}, {transform_indices = @transform_3, window_bounds = array<i64: 16, 128>}]} {
    %c0 = arith.constant 0 : index
    %c0_0 = arith.constant 0 : index
    %0 = memref.load %arg2[%c0, %c0_0] : memref<1x1xf32, #tpu.memory_space<smem>>
    %c0_1 = arith.constant 0 : index
    %c0_2 = arith.constant 0 : index
    %1 = memref.load %arg3[%c0_1, %c0_2] : memref<1x1xf32, #tpu.memory_space<smem>>
    %c0_3 = arith.constant 0 : index
    %c0_4 = arith.constant 0 : index
    %2 = vector.load %arg1[%c0_3, %c0_4] : memref<16x128xf32, #tpu.memory_space<vmem>>, vector<16x128xf32>
    %3 = vector.broadcast %0 : f32 to vector<16x128xf32>
    %4 = arith.mulf %2, %3 : vector<16x128xf32>
    %5 = vector.broadcast %1 : f32 to vector<16x128xf32>
    %6 = arith.addf %4, %5 : vector<16x128xf32>
    %c0_5 = arith.constant 0 : index
    %c0_6 = arith.constant 0 : index
    %7 = vector.load %arg4[%c0_5, %c0_6] : memref<16x128xf32, #tpu.memory_space<vmem>>, vector<16x128xf32>
    tpu.vector_store %arg4[%c0_5, %c0_6], %6 {strides = array<i32>} : memref<16x128xf32, #tpu.memory_space<vmem>>, vector<16x128xf32>,
    return
  }
  func.func @transform_0(%arg0: i32) -> (i32, i32) {
    %c0_i32 = arith.constant 0 : i32
    %c0_i32_0 = arith.constant 0 : i32
    return %arg0, %c0_i32 : i32, i32
  }
  func.func @transform_1(%arg0: i32) -> (i32, i32) {
    %c0_i32 = arith.constant 0 : i32
    %c0_i32_0 = arith.constant 0 : i32
    %c0_i32_1 = arith.constant 0 : i32
    return %c0_i32, %c0_i32_0 : i32, i32
  }
  func.func @transform_2(%arg0: i32) -> (i32, i32) {
    %c0_i32 = arith.constant 0 : i32
    %c0_i32_0 = arith.constant 0 : i32
    %c0_i32_1 = arith.constant 0 : i32
    return %c0_i32, %c0_i32_0 : i32, i32
  }
  func.func @transform_3(%arg0: i32) -> (i32, i32) {
    %c0_i32 = arith.constant 0 : i32
    %c0_i32_0 = arith.constant 0 : i32
    return %arg0, %c0_i32 : i32, i32
  }
}

</mosaic_0001>

<bundles_post_ra>
// kernel: _forward.1
= control target key start
LH: loop header
LB: loop body
LE: loop exit
PB: predicated region body
PF: predicated region fallthrough
CT: control target
= control target key end

     0   :  { %10 = vsyncpa [#allocation5], 0  ;;  %s156_s0 = inlined_call_operand.hbm [shape: f32[16,128], index: 0, kind: input, shape index: {}]   ;;  %s157_s1 = inlined_call_operand.<no memory space> [shape: f32[1,1], index: 1, kind: input, shape index: {}]   ;;  %s158_s2 = inlined_call_operand.<no memory space> [shape: f32[1,1], index: 2, kind: input, shape index: {}]   ;;  %s159_s3 = inlined_call_operand.hbm [shape: f32[16,128], index: 3, kind: output, shape index: {}]  }
   0x1   :  { %11 = vsyncpa [#allocation6], 0  ;;  %s16_s14 = sshll.u32 %s156_s0, 4  ;;  %s120_s15 = smov [#allocation4]   ;;  %s17_s14 = int_to_ptr.hbm [resolvable:$true] %s16_s14 }
   0x2   :  { %s18_s16 = sshll.u32 %s120_s15, 4  ;;  %s121_s17 = smov 128   ;;  %s19_s16 = int_to_ptr.vmem [resolvable:$true] %s18_s16 }
   0x3   :  { %s122_s18 = smov 8  }
   0x4   :  { %24 = dma.hbm_to_vmem [thread:$0]  %s17_s14, 256, %s19_s16, [#allocation5], %s121_s17, %s121_s17, %s122_s18  }
   0x5   :  { %116 = dma.done.wait [#allocation5], 256  }
   0x6   :  { %117 = vsyncadd [#allocation5], 4294967040  ;;  %v37_v0 = vstv %s157_s1  ;;  %v35_v1 = vld [vmem:[#allocation4] sm:$0xff]  ;;  %v40_v2 = vstv %s158_s2  ;;  %v36_v3 = vld [vmem:[#allocation4 + $0x8] sm:$0xff]  ;;  %s123_s0 = smov [#allocation7]   ;;  %s51_s26 = sshll.u32 %s159_s3, 4  ;;  %s52_s26 = int_to_ptr.hbm [resolvable:$true] %s51_s26 }
   0x7   :  { %v38_v4 = vmul.f32 %v37_v0, %v35_v1  ;;  %v39_v5 = vmul.f32 %v37_v0, %v36_v3  ;;  %s49_s23 = sshll.u32 %s123_s0, 4  ;;  %s50_s23 = int_to_ptr.vmem [resolvable:$true] %s49_s23 }
   0x9   :  { %v41_v6 = vadd.f32 %v40_v2, %v38_v4  ;;  %v42_v7 = vadd.f32 %v40_v2, %v39_v5 }
   0xb   :  { %43 = vst [vmem:[#allocation7] sm:$0xff] %v41_v6 }
   0xc   :  { %44 = vst [vmem:[#allocation7 + $0x8] sm:$0xff] %v42_v7 }
   0xd   :  { %57 = dma.vmem_to_hbm [thread:$0]  %s50_s23, 256, %s52_s26, [#allocation6], %s121_s17, %s121_s17, %s122_s18  }
   0xe   :  { %118 = dma.done.wait [#allocation6], 256  }
   0xf   :  { %119 = vsyncadd [#allocation6], 4294967040 }
  0x10   :  { %62 = vsyncpa [#allocation5], 1 }
  0x11   :  { %63 = vsyncpa [#allocation6], 1 }

</bundles_post_ra>
